<compile_context>
chip_gen: v6e
topology: v6e:2x2x1
jax: 0.10.0
libtpu: 0.0.40
codegen_flags: <defaults>
</compile_context>

<pallas_src>
from typing import Any, NamedTuple, Optional

import jax
import jax.numpy as jnp
from jax import lax
from jax.experimental import pallas as pl
from jax.experimental.pallas import tpu as pltpu


def _round_up(x, m):
    return ((x + m - 1) // m) * m


def _cdiv(a, b):
    return -(-a // b)


def _vmem_budget_bytes():
    """~75% of physical per-core VMEM (48 MiB on v7x, ~96 MiB on v5e/v6e)."""
    phys = 64 << 20  # conservative default: v7x per-TC VMEM
    try:
        info = pltpu.get_tpu_info()
        cap = getattr(info, "vmem_capacity_bytes", None)
        if cap:
            phys = int(cap)
    except Exception:
        pass
    return (phys * 3) // 4


class AdapterMLPParams(NamedTuple):
    w1: jax.Array            # (H, I_pad), matmul dtype
    b1: jax.Array            # (1, I_pad), f32
    w2: jax.Array            # (I_pad, O_store), matmul dtype
    ln: jax.Array            # (4, O_store), f32 rows: b2, gamma, beta, valid-mask
    hidden_size: int
    out_features: int
    out_store: int
    matmul_dtype: Optional[Any]
    eps: float


def prepare_adapter_mlp_params(w1, b1, w2, b2, gamma, beta, *, eps=1e-5,
                               matmul_dtype=None, pad_output=None):
    """Pack/pad AdapterMLP parameters once, outside the hot path.

    w1: [H, I], b1: [I], w2: [I, O], b2/gamma/beta: [O]
    (nn.Linear weights stored transposed as [in, out]).
    matmul_dtype: optional dtype for the MXU operands (e.g. jnp.bfloat16, or an
    fp8 dtype on v7x); accumulation and SiLU/LayerNorm stay in f32.
    """
    H, I = w1.shape
    O = w2.shape[1]
    f32 = jnp.float32

    I_pad = _round_up(I, 128)                    # lane-dense intermediate
    if pad_output is None:
        # Small O: store the true width (1x HBM write bytes, no wrapper slice).
        # Large O: lane-pad to a multiple of 128 for unmasked stores.
        pad_output = O >= 128
    O_store = _round_up(O, 128) if pad_output else O

    w1p = jnp.pad(w1, ((0, 0), (0, I_pad - I)))
    b1p = jnp.pad(b1.astype(f32), (0, I_pad - I)).reshape(1, I_pad)
    w2p = jnp.pad(w2, ((0, I_pad - I), (0, O_store - O)))
    ln = jnp.stack([
        jnp.pad(b2.astype(f32), (0, O_store - O)),
        jnp.pad(gamma.astype(f32), (0, O_store - O)),
        jnp.pad(beta.astype(f32), (0, O_store - O)),
        (jnp.arange(O_store) < O).astype(f32),   # precomputed variance mask row
    ], axis=0)

    if matmul_dtype is not None:
        # Weights are small and grid-resident: cast once here.  Activations are
        # NOT cast in the wrapper; the kernel casts x on the fly.
        w1p = w1p.astype(matmul_dtype)
        w2p = w2p.astype(matmul_dtype)

    return AdapterMLPParams(w1p, b1p, w2p, ln, H, O, O_store,
                            matmul_dtype, float(eps))


def _adapter_mlp_kernel(eps, out_cols, store_cols, matmul_dtype):
    inv_o = 1.0 / float(out_cols)
    needs_mask = store_cols > out_cols

    def kernel(x_ref, w1_ref, b1_ref, w2_ref, p_ref, o_ref):
        x = x_ref[...]
        if matmul_dtype is not None and x.dtype != jnp.dtype(matmul_dtype):
            # In-kernel cast: a VPU pack in a non-saturated slot, no extra HBM pass.
            x = x.astype(matmul_dtype)

        # fc1 (MXU, f32 accumulation) + bias + SiLU (VPU/EUP, f32).
        h = jnp.dot(x, w1_ref[...], preferred_element_type=jnp.float32)
        h = h + b1_ref[...]
        h = h * jax.nn.sigmoid(h)

        # fc2 (MXU, f32 accumulation) + bias.
        y = jnp.dot(h.astype(w2_ref.dtype), w2_ref[...],
                    preferred_element_type=jnp.float32)
        y = y + p_ref[0:1, :]                          # b2

        # LayerNorm over the TRUE output columns.  Padded w2/b2 columns are
        # zero, so the row sum over the stored tile equals the true row sum;
        # the precomputed 0/1 mask row zeroes padded columns of (y - mean)
        # before the variance sum (only needed when O is actually padded).
        mean = jnp.sum(y, axis=-1, keepdims=True) * inv_o
        centered = y - mean
        if needs_mask:
            centered = centered * p_ref[3:4, :]
        var = jnp.sum(centered * centered, axis=-1, keepdims=True) * inv_o
        normed = centered * lax.rsqrt(var + eps)
        out = normed * p_ref[1:2, :] + p_ref[2:3, :]   # gamma, beta

        o_ref[...] = out.astype(o_ref.dtype)

    return kernel


def _plan_token_tile(N, tm, sub_q, est_fn, budget):
    # >= 2 grid steps whenever splittable so ("parallel",) can shard tokens
    # across v7x's 2 TensorCores; one extra grid step is ~free on 1-TC parts.
    min_steps = 2 if N > sub_q else 1
    steps = max(_cdiv(N, max(tm, sub_q)), min_steps)
    tm_eff = _round_up(_cdiv(N, steps), sub_q)
    # Shrink the tile (instead of relying on the VMEM limit) if the plan
    # doesn't fit the per-core budget.
    while est_fn(tm_eff) > budget and tm_eff > sub_q:
        tm_eff = max(sub_q, _round_up(tm_eff // 2, sub_q))
    # Rebalance so padding waste is < one sublane quantum per tile.
    steps = _cdiv(N, tm_eff)
    tm_eff = _round_up(_cdiv(N, steps), sub_q)
    steps = _cdiv(N, tm_eff)
    return tm_eff, steps


def adapter_mlp(x, params: AdapterMLPParams, *, tm=512):
    """x: [..., H] activations; params from prepare_adapter_mlp_params.
    Returns [..., O]."""
    H = params.hidden_size
    O, O_store = params.out_features, params.out_store
    lead = x.shape[:-1]
    x2 = x.reshape(-1, H)
    N = x2.shape[0]
    out_dtype = x.dtype

    op_dtype = params.matmul_dtype if params.matmul_dtype is not None else x.dtype
    sub_q = max(8, 32 // jnp.dtype(op_dtype).itemsize)   # 8/f32, 16/bf16, 32/fp8-int8

    I_pad = params.w1.shape[1]
    xb = jnp.dtype(x.dtype).itemsize
    wb = jnp.dtype(params.w1.dtype).itemsize
    ob = jnp.dtype(out_dtype).itemsize

    def est(t):
        return (2 * t * H * xb                          # double-buffered x tiles
                + 2 * t * O_store * ob                  # double-buffered out tiles
                + (H * I_pad + I_pad * O_store) * wb    # single-buffered weights
                + (I_pad + 4 * O_store) * 4             # bias / fused LN params
                + t * (I_pad + 2 * O_store) * 4)        # f32 intermediates

    budget = _vmem_budget_bytes()
    tm_eff, steps = _plan_token_tile(N, tm, sub_q, est, budget)
    N_pad = steps * tm_eff
    if N_pad != N:
        x2 = jnp.pad(x2, ((0, N_pad - N), (0, 0)))

    kernel = _adapter_mlp_kernel(params.eps, O, O_store, params.matmul_dtype)
    vmem_limit = int(min(budget, max(2 * est(tm_eff), 16 << 20)))

    def call(weight_pipeline_mode):
        wkw = ({} if weight_pipeline_mode is None
               else dict(pipeline_mode=weight_pipeline_mode))
        return pl.pallas_call(
            kernel,
            out_shape=jax.ShapeDtypeStruct((N_pad, O_store), out_dtype),
            grid_spec=pltpu.PrefetchScalarGridSpec(
                num_scalar_prefetch=0,
                grid=(steps,),
                in_specs=[
                    pl.BlockSpec((tm_eff, H), lambda i: (i, 0)),              # x tile
                    pl.BlockSpec((H, I_pad), lambda i: (0, 0), **wkw),        # w1 (resident)
                    pl.BlockSpec((1, I_pad), lambda i: (0, 0), **wkw),        # b1
                    pl.BlockSpec((I_pad, O_store), lambda i: (0, 0), **wkw),  # w2 (resident)
                    pl.BlockSpec((4, O_store), lambda i: (0, 0), **wkw),      # b2/gamma/beta/mask
                ],
                out_specs=pl.BlockSpec((tm_eff, O_store), lambda i: (i, 0)),
            ),
            compiler_params=pltpu.CompilerParams(
                dimension_semantics=("parallel",),
                vmem_limit_bytes=vmem_limit,
            ),
        )(x2, params.w1, params.b1, params.w2, params.ln)

    try:
        # Single-buffer the grid-invariant weight/param blocks (halves their VMEM).
        out = call(pl.Buffered(1))
    except Exception:
        # Fallback: default double-buffering if Buffered(1) is rejected.
        out = call(None)

    if N_pad != N or O_store != O:
        out = out[:N, :O]
    return out.reshape(lead + (O,))


def adapter_mlp_reference(x, w1, b1, w2, b2, gamma, beta, eps=1e-5):
    h = x @ w1 + b1
    h = h * jax.nn.sigmoid(h)
    y = h @ w2 + b2
    mean = jnp.mean(y, axis=-1, keepdims=True)
    var = jnp.mean((y - mean) ** 2, axis=-1, keepdims=True)
    return (y - mean) / jnp.sqrt(var + eps) * gamma + beta


if __name__ == "__main__":
    # Synthetic config: vision hidden_size=32 -> intermediate=8, qformer hidden=24.
    batch, seq = 2, 8
    hidden_size = 32
    intermediate_size = hidden_size // 4          # 8
    output_size = 24                              # qformer_config.hidden_size
    eps = 1e-6                                    # vision_config.layer_norm_eps

    key = jax.random.PRNGKey(0)
    k_x, k_w1, k_b1, k_w2, k_b2 = jax.random.split(key, 5)

    hidden_states = jax.random.normal(k_x, (batch, seq, hidden_size), jnp.float32)

    # Deterministic parameters (Linear weights stored transposed: [in, out]).
    w1 = jax.random.normal(k_w1, (hidden_size, intermediate_size), jnp.float32) * 0.05
    b1 = jax.random.normal(k_b1, (intermediate_size,), jnp.float32) * 0.01
    w2 = jax.random.normal(k_w2, (intermediate_size, output_size), jnp.float32) * 0.05
    b2 = jax.random.normal(k_b2, (output_size,), jnp.float32) * 0.01
    gamma = jnp.ones((output_size,), jnp.float32)
    beta = jnp.zeros((output_size,), jnp.float32)

    x2d = hidden_states.reshape(batch * seq, hidden_size)
    ref = adapter_mlp_reference(x2d, w1, b1, w2, b2, gamma, beta, eps=eps)
    ref = ref.reshape(batch, seq, output_size)

    # f32 MXU operands (tight correctness check); params packed ONCE.
    params_f32 = prepare_adapter_mlp_params(w1, b1, w2, b2, gamma, beta, eps=eps)
    out = adapter_mlp(hidden_states, params_f32, tm=512)
    jax.block_until_ready(out)
    assert out.shape == ref.shape
    assert jnp.allclose(out, ref, atol=1e-4, rtol=1e-4), "f32 mismatch vs reference"

    # bf16 MXU operands (weights pre-cast once; x cast in-kernel), f32 accumulation.
    params_bf16 = prepare_adapter_mlp_params(w1, b1, w2, b2, gamma, beta, eps=eps,
                                             matmul_dtype=jnp.bfloat16)
    out_bf16 = adapter_mlp(hidden_states, params_bf16, tm=512)
    jax.block_until_ready(out_bf16)
    assert bool(jnp.all(jnp.isfinite(out_bf16))), "bf16 run produced non-finite values"
    assert jnp.allclose(out_bf16, ref, atol=0.1, rtol=0.1), "bf16 mismatch vs reference"

    print("KERNEL_OK")
</pallas_src>

<mosaic_0001>
module attributes {stable_mosaic.version = 11 : i64} {
  func.func @kernel(%arg0: i32, %arg1: memref<8x32xf32, #tpu.memory_space<vmem>>, %arg2: memref<32x128xf32, #tpu.memory_space<vmem>>, %arg3: memref<1x128xf32, #tpu.memory_space<vmem>>, %arg4: memref<128x24xf32, #tpu.memory_space<vmem>>, %arg5: memref<4x24xf32, #tpu.memory_space<vmem>>, %arg6: memref<8x24xf32, #tpu.memory_space<vmem>>) attributes {dimension_semantics = [#tpu.dimension_semantics<parallel>], iteration_bounds = array<i64: 2>, scalar_prefetch = 0 : i64, scratch_operands = 0 : i64, tpu.core_type = #tpu.core_type<tc>, window_params = [{transform_indices = @transform_0, window_bounds = array<i64: 8, 32>}, {pipeline_mode = #tpu.pipeline_mode<synchronous>, transform_indices = @transform_1, window_bounds = array<i64: 32, 128>}, {pipeline_mode = #tpu.pipeline_mode<synchronous>, transform_indices = @transform_2, window_bounds = array<i64: 1, 128>}, {pipeline_mode = #tpu.pipeline_mode<synchronous>, transform_indices = @transform_3, window_bounds = array<i64: 128, 24>}, {pipeline_mode = #tpu.pipeline_mode<synchronous>, transform_indices = @transform_4, window_bounds = array<i64: 4, 24>}, {transform_indices = @transform_5, window_bounds = array<i64: 8, 24>}]} {
    %c0 = arith.constant 0 : index
    %c0_0 = arith.constant 0 : index
    %0 = vector.load %arg1[%c0, %c0_0] : memref<8x32xf32, #tpu.memory_space<vmem>>, vector<8x32xf32>
    %c0_1 = arith.constant 0 : index
    %c0_2 = arith.constant 0 : index
    %1 = vector.load %arg2[%c0_1, %c0_2] : memref<32x128xf32, #tpu.memory_space<vmem>>, vector<32x128xf32>
    %cst = arith.constant dense<0.000000e+00> : vector<8x128xf32>
    %2 = tpu.matmul %0, %1, %cst {dimension_numbers = #tpu.dot_dimension_numbers<[1], [0], [0], [1], [0, 0, 1, 1], [], []>} : vector<8x32xf32>, vector<32x128xf32>, vector<8x128xf32> -> vector<8x128xf32>
    %c0_3 = arith.constant 0 : index
    %c0_4 = arith.constant 0 : index
    %3 = vector.load %arg3[%c0_3, %c0_4] : memref<1x128xf32, #tpu.memory_space<vmem>>, vector<1x128xf32>
    %4 = vector.broadcast %3 : vector<1x128xf32> to vector<8x128xf32>
    %5 = arith.addf %2, %4 : vector<8x128xf32>
    %6 = arith.negf %5 : vector<8x128xf32>
    %7 = math.exp %6 : vector<8x128xf32>
    %cst_5 = arith.constant 1.000000e+00 : f32
    %8 = vector.broadcast %cst_5 : f32 to vector<8x128xf32>
    %9 = arith.addf %8, %7 : vector<8x128xf32>
    %10 = arith.divf %8, %9 : vector<8x128xf32>
    %11 = arith.mulf %5, %10 : vector<8x128xf32>
    %c0_6 = arith.constant 0 : index
    %c0_7 = arith.constant 0 : index
    %12 = vector.load %arg4[%c0_6, %c0_7] : memref<128x24xf32, #tpu.memory_space<vmem>>, vector<128x24xf32>
    %cst_8 = arith.constant dense<0.000000e+00> : vector<8x24xf32>
    %13 = tpu.matmul %11, %12, %cst_8 {dimension_numbers = #tpu.dot_dimension_numbers<[1], [0], [0], [1], [0, 0, 1, 1], [], []>} : vector<8x128xf32>, vector<128x24xf32>, vector<8x24xf32> -> vector<8x24xf32>
    %c0_9 = arith.constant 0 : index
    %c0_10 = arith.constant 0 : index
    %14 = vector.load %arg5[%c0_9, %c0_10] : memref<4x24xf32, #tpu.memory_space<vmem>>, vector<1x24xf32>
    %15 = vector.broadcast %14 : vector<1x24xf32> to vector<8x24xf32>
    %16 = arith.addf %13, %15 : vector<8x24xf32>
    %cst_11 = arith.constant dense<0.000000e+00> : vector<8xf32>
    %17 = vector.multi_reduction <add>, %16, %cst_11 [1] : vector<8x24xf32> to vector<8xf32>
    %18 = vector.shape_cast %17 : vector<8xf32> to vector<8x1xf32>
    %cst_12 = arith.constant 0.0416666679 : f32
    %19 = vector.broadcast %cst_12 : f32 to vector<8x1xf32>
    %20 = arith.mulf %18, %19 : vector<8x1xf32>
    %21 = vector.broadcast %20 : vector<8x1xf32> to vector<8x24xf32>
    %22 = arith.subf %16, %21 : vector<8x24xf32>
    %23 = arith.mulf %22, %22 : vector<8x24xf32>
    %cst_13 = arith.constant dense<0.000000e+00> : vector<8xf32>
    %24 = vector.multi_reduction <add>, %23, %cst_13 [1] : vector<8x24xf32> to vector<8xf32>
    %25 = vector.shape_cast %24 : vector<8xf32> to vector<8x1xf32>
    %cst_14 = arith.constant 0.0416666679 : f32
    %26 = vector.broadcast %cst_14 : f32 to vector<8x1xf32>
    %27 = arith.mulf %25, %26 : vector<8x1xf32>
    %cst_15 = arith.constant 9.99999997E-7 : f32
    %28 = vector.broadcast %cst_15 : f32 to vector<8x1xf32>
    %29 = arith.addf %27, %28 : vector<8x1xf32>
    %30 = math.rsqrt %29 : vector<8x1xf32>
    %31 = vector.broadcast %30 : vector<8x1xf32> to vector<8x24xf32>
    %32 = arith.mulf %22, %31 : vector<8x24xf32>
    %c1 = arith.constant 1 : index
    %c0_16 = arith.constant 0 : index
    %33 = vector.load %arg5[%c1, %c0_16] : memref<4x24xf32, #tpu.memory_space<vmem>>, vector<1x24xf32>
    %34 = vector.broadcast %33 : vector<1x24xf32> to vector<8x24xf32>
    %35 = arith.mulf %32, %34 : vector<8x24xf32>
    %c2 = arith.constant 2 : index
    %c0_17 = arith.constant 0 : index
    %36 = vector.load %arg5[%c2, %c0_17] : memref<4x24xf32, #tpu.memory_space<vmem>>, vector<1x24xf32>
    %37 = vector.broadcast %36 : vector<1x24xf32> to vector<8x24xf32>
    %38 = arith.addf %35, %37 : vector<8x24xf32>
    %c0_18 = arith.constant 0 : index
    %c0_19 = arith.constant 0 : index
    %39 = vector.load %arg6[%c0_18, %c0_19] : memref<8x24xf32, #tpu.memory_space<vmem>>, vector<8x24xf32>
    tpu.vector_store %arg6[%c0_18, %c0_19], %38 {strides = array<i32>} : memref<8x24xf32, #tpu.memory_space<vmem>>, vector<8x24xf32>,
    return
  }
  func.func @transform_0(%arg0: i32) -> (i32, i32) {
    %c0_i32 = arith.constant 0 : i32
    %c0_i32_0 = arith.constant 0 : i32
    return %arg0, %c0_i32 : i32, i32
  }
  func.func @transform_1(%arg0: i32) -> (i32, i32) {
    %c0_i32 = arith.constant 0 : i32
    %c0_i32_0 = arith.constant 0 : i32
    %c0_i32_1 = arith.constant 0 : i32
    return %c0_i32, %c0_i32_0 : i32, i32
  }
  func.func @transform_2(%arg0: i32) -> (i32, i32) {
    %c0_i32 = arith.constant 0 : i32
    %c0_i32_0 = arith.constant 0 : i32
    %c0_i32_1 = arith.constant 0 : i32
    return %c0_i32, %c0_i32_0 : i32, i32
  }
  func.func @transform_3(%arg0: i32) -> (i32, i32) {
    %c0_i32 = arith.constant 0 : i32
    %c0_i32_0 = arith.constant 0 : i32
    %c0_i32_1 = arith.constant 0 : i32
    return %c0_i32, %c0_i32_0 : i32, i32
  }
  func.func @transform_4(%arg0: i32) -> (i32, i32) {
    %c0_i32 = arith.constant 0 : i32
    %c0_i32_0 = arith.constant 0 : i32
    %c0_i32_1 = arith.constant 0 : i32
    return %c0_i32, %c0_i32_0 : i32, i32
  }
  func.func @transform_5(%arg0: i32) -> (i32, i32) {
    %c0_i32 = arith.constant 0 : i32
    %c0_i32_0 = arith.constant 0 : i32
    return %arg0, %c0_i32 : i32, i32
  }
}

module attributes {stable_mosaic.version = 11 : i64} {
  func.func @kernel(%arg0: i32, %arg1: memref<8x32xf32, #tpu.memory_space<vmem>>, %arg2: memref<32x128xf32, #tpu.memory_space<vmem>>, %arg3: memref<1x128xf32, #tpu.memory_space<vmem>>, %arg4: memref<128x24xf32, #tpu.memory_space<vmem>>, %arg5: memref<4x24xf32, #tpu.memory_space<vmem>>, %arg6: memref<8x24xf32, #tpu.memory_space<vmem>>) attributes {dimension_semantics = [#tpu.dimension_semantics<parallel>], iteration_bounds = array<i64: 2>, scalar_prefetch = 0 : i64, scratch_operands = 0 : i64, tpu.core_type = #tpu.core_type<tc>, window_params = [{transform_indices = @transform_0, window_bounds = array<i64: 8, 32>}, {pipeline_mode = #tpu.pipeline_mode<synchronous>, transform_indices = @transform_1, window_bounds = array<i64: 32, 128>}, {pipeline_mode = #tpu.pipeline_mode<synchronous>, transform_indices = @transform_2, window_bounds = array<i64: 1, 128>}, {pipeline_mode = #tpu.pipeline_mode<synchronous>, transform_indices = @transform_3, window_bounds = array<i64: 128, 24>}, {pipeline_mode = #tpu.pipeline_mode<synchronous>, transform_indices = @transform_4, window_bounds = array<i64: 4, 24>}, {transform_indices = @transform_5, window_bounds = array<i64: 8, 24>}]} {
    %c0 = arith.constant 0 : index
    %c0_0 = arith.constant 0 : index
    %0 = vector.load %arg1[%c0, %c0_0] : memref<8x32xf32, #tpu.memory_space<vmem>>, vector<8x32xf32>
    %c0_1 = arith.constant 0 : index
    %c0_2 = arith.constant 0 : index
    %1 = vector.load %arg2[%c0_1, %c0_2] : memref<32x128xf32, #tpu.memory_space<vmem>>, vector<32x128xf32>
    %cst = arith.constant dense<0.000000e+00> : vector<8x128xf32>
    %2 = tpu.matmul %0, %1, %cst {dimension_numbers = #tpu.dot_dimension_numbers<[1], [0], [0], [1], [0, 0, 1, 1], [], []>} : vector<8x32xf32>, vector<32x128xf32>, vector<8x128xf32> -> vector<8x128xf32>
    %c0_3 = arith.constant 0 : index
    %c0_4 = arith.constant 0 : index
    %3 = vector.load %arg3[%c0_3, %c0_4] : memref<1x128xf32, #tpu.memory_space<vmem>>, vector<1x128xf32>
    %4 = vector.broadcast %3 : vector<1x128xf32> to vector<8x128xf32>
    %5 = arith.addf %2, %4 : vector<8x128xf32>
    %6 = arith.negf %5 : vector<8x128xf32>
    %7 = math.exp %6 : vector<8x128xf32>
    %cst_5 = arith.constant 1.000000e+00 : f32
    %8 = vector.broadcast %cst_5 : f32 to vector<8x128xf32>
    %9 = arith.addf %8, %7 : vector<8x128xf32>
    %10 = arith.divf %8, %9 : vector<8x128xf32>
    %11 = arith.mulf %5, %10 : vector<8x128xf32>
    %c0_6 = arith.constant 0 : index
    %c0_7 = arith.constant 0 : index
    %12 = vector.load %arg4[%c0_6, %c0_7] : memref<128x24xf32, #tpu.memory_space<vmem>>, vector<128x24xf32>
    %cst_8 = arith.constant dense<0.000000e+00> : vector<8x24xf32>
    %13 = tpu.matmul %11, %12, %cst_8 {dimension_numbers = #tpu.dot_dimension_numbers<[1], [0], [0], [1], [0, 0, 1, 1], [], []>} : vector<8x128xf32>, vector<128x24xf32>, vector<8x24xf32> -> vector<8x24xf32>
    %c0_9 = arith.constant 0 : index
    %c0_10 = arith.constant 0 : index
    %14 = vector.load %arg5[%c0_9, %c0_10] : memref<4x24xf32, #tpu.memory_space<vmem>>, vector<1x24xf32>
    %15 = vector.broadcast %14 : vector<1x24xf32> to vector<8x24xf32>
    %16 = arith.addf %13, %15 : vector<8x24xf32>
    %cst_11 = arith.constant dense<0.000000e+00> : vector<8xf32>
    %17 = vector.multi_reduction <add>, %16, %cst_11 [1] : vector<8x24xf32> to vector<8xf32>
    %18 = vector.shape_cast %17 : vector<8xf32> to vector<8x1xf32>
    %cst_12 = arith.constant 0.0416666679 : f32
    %19 = vector.broadcast %cst_12 : f32 to vector<8x1xf32>
    %20 = arith.mulf %18, %19 : vector<8x1xf32>
    %21 = vector.broadcast %20 : vector<8x1xf32> to vector<8x24xf32>
    %22 = arith.subf %16, %21 : vector<8x24xf32>
    %23 = arith.mulf %22, %22 : vector<8x24xf32>
    %cst_13 = arith.constant dense<0.000000e+00> : vector<8xf32>
    %24 = vector.multi_reduction <add>, %23, %cst_13 [1] : vector<8x24xf32> to vector<8xf32>
    %25 = vector.shape_cast %24 : vector<8xf32> to vector<8x1xf32>
    %cst_14 = arith.constant 0.0416666679 : f32
    %26 = vector.broadcast %cst_14 : f32 to vector<8x1xf32>
    %27 = arith.mulf %25, %26 : vector<8x1xf32>
    %cst_15 = arith.constant 9.99999997E-7 : f32
    %28 = vector.broadcast %cst_15 : f32 to vector<8x1xf32>
    %29 = arith.addf %27, %28 : vector<8x1xf32>
    %30 = math.rsqrt %29 : vector<8x1xf32>
    %31 = vector.broadcast %30 : vector<8x1xf32> to vector<8x24xf32>
    %32 = arith.mulf %22, %31 : vector<8x24xf32>
    %c1 = arith.constant 1 : index
    %c0_16 = arith.constant 0 : index
    %33 = vector.load %arg5[%c1, %c0_16] : memref<4x24xf32, #tpu.memory_space<vmem>>, vector<1x24xf32>
    %34 = vector.broadcast %33 : vector<1x24xf32> to vector<8x24xf32>
    %35 = arith.mulf %32, %34 : vector<8x24xf32>
    %c2 = arith.constant 2 : index
    %c0_17 = arith.constant 0 : index
    %36 = vector.load %arg5[%c2, %c0_17] : memref<4x24xf32, #tpu.memory_space<vmem>>, vector<1x24xf32>
    %37 = vector.broadcast %36 : vector<1x24xf32> to vector<8x24xf32>
    %38 = arith.addf %35, %37 : vector<8x24xf32>
    %c0_18 = arith.constant 0 : index
    %c0_19 = arith.constant 0 : index
    %39 = vector.load %arg6[%c0_18, %c0_19] : memref<8x24xf32, #tpu.memory_space<vmem>>, vector<8x24xf32>
    tpu.vector_store %arg6[%c0_18, %c0_19], %38 {strides = array<i32>} : memref<8x24xf32, #tpu.memory_space<vmem>>, vector<8x24xf32>,
    return
  }
  func.func @transform_0(%arg0: i32) -> (i32, i32) {
    %c0_i32 = arith.constant 0 : i32
    %c0_i32_0 = arith.constant 0 : i32
    return %arg0, %c0_i32 : i32, i32
  }
  func.func @transform_1(%arg0: i32) -> (i32, i32) {
    %c0_i32 = arith.constant 0 : i32
    %c0_i32_0 = arith.constant 0 : i32
    %c0_i32_1 = arith.constant 0 : i32
    return %c0_i32, %c0_i32_0 : i32, i32
  }
  func.func @transform_2(%arg0: i32) -> (i32, i32) {
    %c0_i32 = arith.constant 0 : i32
    %c0_i32_0 = arith.constant 0 : i32
    %c0_i32_1 = arith.constant 0 : i32
    return %c0_i32, %c0_i32_0 : i32, i32
  }
  func.func @transform_3(%arg0: i32) -> (i32, i32) {
    %c0_i32 = arith.constant 0 : i32
    %c0_i32_0 = arith.constant 0 : i32
    %c0_i32_1 = arith.constant 0 : i32
    return %c0_i32, %c0_i32_0 : i32, i32
  }
  func.func @transform_4(%arg0: i32) -> (i32, i32) {
    %c0_i32 = arith.constant 0 : i32
    %c0_i32_0 = arith.constant 0 : i32
    %c0_i32_1 = arith.constant 0 : i32
    return %c0_i32, %c0_i32_0 : i32, i32
  }
  func.func @transform_5(%arg0: i32) -> (i32, i32) {
    %c0_i32 = arith.constant 0 : i32
    %c0_i32_0 = arith.constant 0 : i32
    return %arg0, %c0_i32 : i32, i32
  }
}

</mosaic_0001>

<bundles_post_ra>
// kernel: tpu_custom_call.1
= control target key start
LH: loop header
LB: loop body
LE: loop exit
PB: predicated region body
PF: predicated region fallthrough
CT: control target
= control target key end

     0   :  { %10 = vsyncpa [#allocation3], 0  ;;  %s914_s0 = inlined_call_operand.vmem [shape: f32[16,32], index: 0, kind: input, shape index: {}]   ;;  %s915_s1 = inlined_call_operand.vmem [shape: f32[32,128], index: 1, kind: input, shape index: {}]   ;;  %s916_s2 = inlined_call_operand.vmem [shape: f32[1,128], index: 2, kind: input, shape index: {}]   ;;  %s917_s3 = inlined_call_operand.vmem [shape: f32[128,24], index: 3, kind: input, shape index: {}]   ;;  %s918_s4 = inlined_call_operand.vmem [shape: f32[4,24], index: 4, kind: input, shape index: {}]   ;;  %s919_s5 = inlined_call_operand.hbm [shape: f32[16,24], index: 5, kind: output, shape index: {}]  }
   0x1   :  { %12 = vsyncpa [#allocation3 + $0x1], 0  ;;  %s730_s18 = smov 0   ;;  %s732_s19 = smov 0  }
   0x2   :  { %s734_s20 = smov 0   ;;  %s736_s21 = smov 0  }
   0x3 LB: > { %s751_s22 = sadd.s32 4294967295, %s695_s21   ;;  %s504_s23 = sadd.s32 4294967294, %s695_s21   ;;  %s695_s21 = sphi %s736_s21, %s925_s21   ;;  %s691_s20 = sphi %s734_s20, %s924_s20   ;;  %s687_s19 = sphi %s732_s19, %s923_s19   ;;  %s683_s18 = sphi %s730_s18, %s922_s18  }
   0x4   : > { %s755_s24 = sadd.s32 1, %s695_s21   ;;  %s135_s25 = sadd.s32 1, %s691_s20 }
   0x5   : > { %s132_s26 = ssub.s32 %s695_s21, %s755_s24  ;;  %p145_p0 = scmp.ne.s32.totalorder %s691_s20, %s687_s19 }
   0x6   : > { %p133_p1 = scmp.eq.s32.totalorder %s132_s26, 0  ;;  %p146_p2 = scmp.eq.s32.totalorder %s751_s22, 1 }
   0x7   : > { %p151_p3 = scmp.ne.s32.totalorder %s687_s19, %s683_s18  ;;  %p152_p4 = scmp.eq.s32.totalorder %s504_s23, 1 }
   0x8   : > { %s766_s27 = scalar_select %p133_p1, %s691_s20, %s135_s25  }
   0x9   : > { %p768_p5 = por %p146_p2, %p145_p0  ;;  %p772_p6 = por %p152_p4, %p151_p3 }
   0xa   : > { %p507_p7 = scmp.ge.s32.totalorder %s695_s21, 1  ;;  %p189_p8 = scmp.lt.s32.totalorder %s695_s21, 3 }
   0xc   : > { %p190_p9 = pnand %p507_p7, %p189_p8 }
   0xd   : > { %p216_p10 = scmp.lt.s32.totalorder (!%p190_p9), %s751_s22, 1  ;;  %s213_s6 = sand.u32 (!%p190_p9), 1, %s687_s19  }
   0xe   : > { %193 = sbr.rel (%p190_p9) target bundleno = 773 (0x305), region = 40  ;;  %s508_s7 = sshll.u32 (!%p190_p9), %s213_s6, 3 }
   0xf   : > { %s215_s13 = scalar_lea.vmem (!%p190_p9), [#allocation2], %s508_s7  ;;  %s432_s23 = scalar_lea.sflag (!%p190_p9), [#allocation3], %s213_s6 }
  0x10   : > { %s445_s14 = sshll.u32 (!%p190_p9), %s215_s13, 4  ;;  %s699_s26 = smov (!%p190_p9), [#allocation2]   ;;  %s446_s14 = int_to_ptr.vmem [resolvable:$true] %s445_s14 }
  0x11   : > { %s635_s25 = scalar_lea.vmem (!%p190_p9), %s446_s14, 128  ;;  %s639_s30 = sshll.u32 (!%p190_p9), %s699_s26, 4  ;;  %s640_s30 = int_to_ptr.vmem [resolvable:$false] %s639_s30 }
  0x12   : > { %p636_p11 = scmp.ne.s32.totalorder (!%p190_p9), %s446_s14, %s635_s25  ;;  %p642_p0 = scmp.lt.s32.totalorder (!%p190_p9), %s446_s14, %s640_s30 }
  0x13   : > { %v224_v0 = vld [vmem:[%s915_s1 + $0x18] sm:$0xff]  ;;  %v697_v1 = vmov 0.0   ;;  %v223_v2 = vld [vmem:[%s915_s1 + $0x10] sm:$0xff]  ;;  %vm698_vm0 = vmmov 0   ;;  %s217_s9 = scalar_select %p216_p10, %s751_s22, 1  ;;  %v222_v3 = vld [vmem:[%s915_s1 + $0x8] sm:$0xff] }
  0x14   : > { %542 = vmatprep.subr.mxu0 %v697_v1  ;;  %550 = vmatprep.mubr.msk.f32.mxu0 %vm698_vm0, %v697_v1  ;;  %v221_v4 = vld [vmem:[%s915_s1] sm:$0xff]  ;;  %vm232_vm1 = vcmask 261120   ;;  %v328_v6 = vld [vmem:[%s917_s3 + $0x78] sm:$0xff]  ;;  %v327_v7 = vld [vmem:[%s917_s3 + $0x70] sm:$0xff]  ;;  %vm404_vm2 = vcmask 195584   ;;  %p637_p12 = pnand %p636_p11, %p768_p5 }
  0x15   : > { %543 = vmatpush3.msra.mxu0 %v224_v0  ;;  %553 = vmatprep.subr.mxu1 %v697_v1  ;;  %s509_s12 = sshll.u32 %s217_s9, 3  ;;  %v326_v8 = vld [vmem:[%s917_s3 + $0x68] sm:$0xff]  ;;  %v325_v9 = vld [vmem:[%s917_s3 + $0x60] sm:$0xff]  ;;  %v324_v10 = vld [vmem:[%s917_s3 + $0x58] sm:$0xff] }
  0x16   : > { %544 = vmatprep.subr.mxu0 %v697_v1  ;;  %585 = vmatprep.mubr.msk.f32.mxu1 %vm698_vm0, %v697_v1  ;;  %s219_s17 = scalar_lea.vmem %s914_s0, %s509_s12  ;;  %v323_v11 = vld [vmem:[%s917_s3 + $0x50] sm:$0xff]  ;;  %v322_v12 = vld [vmem:[%s917_s3 + $0x48] sm:$0xff]  ;;  %v321_v13 = vld [vmem:[%s917_s3 + $0x40] sm:$0xff]  ;;  %s517_s12 = sshll.u32 %s751_s22, 7 }
  0x17   : > { %545 = vmatpush3.msra.mxu0 %v223_v2  ;;  %v220_v5 = vld [vmem:[%s219_s17] sm:$0xff]  ;;  %554 = vmatpush3.msra.mxu1 %v328_v6  ;;  %v320_v14 = vld [vmem:[%s917_s3 + $0x38] sm:$0xff]  ;;  %v319_v15 = vld [vmem:[%s917_s3 + $0x30] sm:$0xff]  ;;  %s443_s17 = scalar_lea.hbm %s919_s5, %s517_s12  ;;  %p638_p13 = pneg %p637_p12 }
  0x18   : > { %546 = vmatprep.subr.mxu0 %v697_v1  ;;  %555 = vmatprep.subr.mxu1 %v697_v1  ;;  %v318_v16 = vld [vmem:[%s917_s3 + $0x28] sm:$0xff]  ;;  %v317_v17 = vld [vmem:[%s917_s3 + $0x20] sm:$0xff]  ;;  %v316_v18 = vld [vmem:[%s917_s3 + $0x18] sm:$0xff]  ;;  %s641_s22 = scalar_lea.vmem %s640_s30, 256 }
  0x19   : > { %547 = vmatpush3.msra.mxu0 %v222_v3  ;;  %556 = vmatpush3.msra.mxu1 %v327_v7  ;;  %v315_v19 = vld [vmem:[%s917_s3 + $0x10] sm:$0xff]  ;;  %v314_v20 = vld [vmem:[%s917_s3 + $0x8] sm:$0xff]  ;;  %v313_v21 = vld [vmem:[%s917_s3] sm:$0xff]  ;;  %p643_p1 = scmp.lt.s32.totalorder %s641_s22, %s635_s25 }
  0x1a   : > { %548 = vmatprep.subr.mxu0 %v697_v1  ;;  %557 = vmatprep.subr.mxu1 %v697_v1  ;;  %v510_v22 = vld [vmem:[%s916_s2] ss:$0 sm:$0xff]  ;;  %v514_v45 = vld [vmem:[%s918_s4 + $0x1] ss:$0 sm:$0xff]  ;;  %v515_v47 = vld [vmem:[%s918_s4 + $0x2] ss:$0 sm:$0xff] }
  0x1b   : > { %549 = vmatpush3.msra.mxu0 %v221_v4  ;;  %558 = vmatpush3.msra.mxu1 %v326_v8  ;;  %v513_v31 = vld [vmem:[%s918_s4] ss:$0 sm:$0xff]  ;;  %p644_p2 = por %p643_p1, %p642_p0 }
  0x1c   : > { %551 = vmatmul.mubr.msk.f32.vlgmr.msra.gmra.mxu0 %vm232_vm1, %v220_v5  ;;  %559 = vmatprep.subr.mxu1 %v697_v1 }
  0x1d   : > { %560 = vmatpush3.msra.mxu1 %v325_v9  ;;  %p645_p3 = pnand %p644_p2, %p638_p13 }
  0x1e   : > { %561 = vmatprep.subr.mxu1 %v697_v1 }
  0x1f   : > { %562 = vmatpush3.msra.mxu1 %v324_v10 }
  0x20   : > { %563 = vmatprep.subr.mxu1 %v697_v1 }
  0x21   : > { %564 = vmatpush3.msra.mxu1 %v323_v11 }
  0x22   : > { %565 = vmatprep.subr.mxu1 %v697_v1 }
  0x23   : > { %566 = vmatpush3.msra.mxu1 %v322_v12 }
  0x24   : > { %567 = vmatprep.subr.mxu1 %v697_v1 }
  0x25   : > { %568 = vmatpush3.msra.mxu1 %v321_v13 }
  0x26   : > { %569 = vmatprep.subr.mxu1 %v697_v1 }
  0x27   : > { %570 = vmatpush3.msra.mxu1 %v320_v14 }
  0x28   : > { %571 = vmatprep.subr.mxu1 %v697_v1 }
  0x29   : > { %572 = vmatpush3.msra.mxu1 %v319_v15 }
  0x2a   : > { %573 = vmatprep.subr.mxu1 %v697_v1 }
  0x2b   : > { %574 = vmatpush3.msra.mxu1 %v318_v16 }
  0x2c   : > { %575 = vmatprep.subr.mxu1 %v697_v1 }
  0x2d   : > { %576 = vmatpush3.msra.mxu1 %v317_v17 }
  0x2e   : > { %577 = vmatprep.subr.mxu1 %v697_v1 }
  0x2f   : > { %578 = vmatpush3.msra.mxu1 %v316_v18 }
  0x30   : > { %579 = vmatprep.subr.mxu1 %v697_v1 }
  0x31   : > { %580 = vmatpush3.msra.mxu1 %v315_v19 }
  0x32   : > { %581 = vmatprep.subr.mxu1 %v697_v1 }
  0x33   : > { %582 = vmatpush3.msra.mxu1 %v314_v20 }
  0x34   : > { %583 = vmatprep.subr.mxu1 %v697_v1 }
  0x35   : > { %584 = vmatpush3.msra.mxu1 %v313_v21 }
  0xdc   : > { %v302_v23 = vpop.f32.mrf.mxu0 }
  0xdd   : > { %v303_v24 = vadd.f32 %v510_v22, %v302_v23 }
  0xde   : > { %v552_v25 = vpop.f32.mrf.mxu0 }
  0xdf   : > { %v512_v26 = vmul.f32 -1.442695, %v303_v24 }
  0xe1   : > { %629 = vpow2.f32 %v512_v26 }
  0xee   : > { %v630_v27 = vpop.eup %629 }
  0xef   : > { %v309_v28 = vadd.f32 1.0, %v630_v27 }
  0xf1   : > { %631 = vrcp.f32 %v309_v28 }
  0xfe   : > { %v632_v29 = vpop.eup %631 }
  0xff   : > { %v312_v30 = vmul.f32 %v632_v29, %v303_v24 }
 0x101   : > { %586 = vmatmul.mubr.f32.vlgmr.msra.gmra.mxu1 %v312_v30 }
 0x1c1   : > { %v400_v32 = vpop.f32.mrf.mxu1 }
 0x1c2   : > { %v401_v33 = vadd.f32 %v513_v31, %v400_v32 }
 0x1c3   : > { %v587_v34 = vpop.f32.mrf.mxu1 }
 0x1c4   : > { %v405_v35 = vsel %vm404_vm2, %v401_v33, 0.0 }
 0x1c5   : > { %406 = vadd.xlane.f32.xlu0 %v405_v35 }
 0x24e   : > { %v407_v36 = vpop.xlane.xlu0 %406 }
 0x24f   : > { %v408_v37 = vmul.f32 0.041666668, %v407_v36 }
 0x251   : > { %v409_v38 = vsub.f32 %v401_v33, %v408_v37 }
 0x253   : > { %v410_v39 = vmul.f32 %v409_v38, %v409_v38 }
 0x255   : > { %v411_v40 = vsel %vm404_vm2, %v410_v39, 0.0 }
 0x256   : > { %412 = vadd.xlane.f32.xlu0 %v411_v40 }
 0x2df   : > { %v413_v41 = vpop.xlane.xlu0 %412 }
 0x2e0   : > { %v414_v42 = vmul.f32 0.041666668, %v413_v41 }
 0x2e2   : > { %v415_v43 = vadd.f32 1e-06, %v414_v42 }
 0x2e4   : > { %633 = vrsqrt.f32 %v415_v43 }
 0x2f1   : > { %v634_v44 = vpop.eup %633 }
 0x2f2   : > { %v417_v46 = vmul.f32 %v634_v44, %v409_v38 }
 0x2f4   : > { %v423_v48 = vmul.f32 %v514_v45, %v417_v46 }
 0x2f6   : > { %v429_v49 = vadd.f32 %v515_v47, %v423_v48 }
 0x2f8   : > { %430 = vst.msk [vmem:[%s215_s13] sm:$0xff] %vm404_vm2, %v429_v49 }
 0x2f9   : > { %648 = shalt.err (!%p645_p3)
}
 0x2fa   : > { %s649_s7 = scalar_lea.hbm %s443_s17, 128  ;;  %s653_s9 = scalar_lea.hbm %s919_s5, 256 }
 0x2fb   : > { %p650_p4 = scmp.ne.s32.totalorder %s443_s17, %s649_s7  ;;  %p654_p9 = scmp.lt.s32.totalorder %s443_s17, %s919_s5 }
 0x2fc   : > { %p655_p10 = scmp.lt.s32.totalorder %s653_s9, %s649_s7 }
 0x2fd   : > { %p651_p7 = pnand %p650_p4, %p768_p5 }
 0x2fe   : > { %p656_p11 = por %p655_p10, %p654_p9 }
 0x2ff   : > { %p652_p8 = pneg %p651_p7 }
 0x301   : > { %p657_p12 = pnand %p656_p11, %p652_p8 }
 0x303   : > { %660 = shalt.err (!%p657_p12)
}
 0x304   : > { %588 = dma.vmem_to_hbm [thread:$0]  (%p768_p5), %s446_s14, 128, %s443_s17, %s432_s23  }
 0x305 PF: > { %p594_p13 = scmp.ge.s32.totalorder %s695_s21, 2  ;;  %s457_s12 = sand.u32 1, %s683_s18  }
 0x306   : > { %s458_s13 = scalar_lea.sflag [#allocation3], %s457_s12 }
 0x307   : > { %p591_p0 = pnand %p594_p13, %p772_p6 }
 0x309   : > { %p592_p1 = pneg %p591_p0 }
 0x30b   : > { %678 = dma.done.wait (%p592_p1), %s458_s13, 128  }
 0x30c   : > { %680 = vsyncadd (%p592_p1), %s458_s13, 4294967168  ;;  %p15_p2 = scmp.ge.s32.totalorder %s755_s24, 4   ;;  %s922_s18 = smov %s687_s19 }
 0x30d   : > { %s923_s19 = smov %s691_s20  ;;  %s924_s20 = smov %s766_s27 }
 0x30e   : > { %s925_s21 = smov %s755_s24  ;;  %17 = sbr.rel (!%p15_p2) target bundleno = 3 (0x3), region = 75 }
 0x313   :  { %463 = vsyncpa [#allocation3], 1 }
 0x314   :  { %465 = vsyncpa [#allocation3 + $0x1], 1 }

// kernel: tpu_custom_call.1
= control target key start
LH: loop header
LB: loop body
LE: loop exit
PB: predicated region body
PF: predicated region fallthrough
CT: control target
= control target key end

     0   :  { %10 = vsyncpa [#allocation3], 0  ;;  %s914_s0 = inlined_call_operand.vmem [shape: f32[16,32], index: 0, kind: input, shape index: {}]   ;;  %s915_s1 = inlined_call_operand.vmem [shape: f32[32,128], index: 1, kind: input, shape index: {}]   ;;  %s916_s2 = inlined_call_operand.vmem [shape: f32[1,128], index: 2, kind: input, shape index: {}]   ;;  %s917_s3 = inlined_call_operand.vmem [shape: f32[128,24], index: 3, kind: input, shape index: {}]   ;;  %s918_s4 = inlined_call_operand.vmem [shape: f32[4,24], index: 4, kind: input, shape index: {}]   ;;  %s919_s5 = inlined_call_operand.hbm [shape: f32[16,24], index: 5, kind: output, shape index: {}]  }
   0x1   :  { %12 = vsyncpa [#allocation3 + $0x1], 0  ;;  %s730_s18 = smov 0   ;;  %s732_s19 = smov 0  }
   0x2   :  { %s734_s20 = smov 0   ;;  %s736_s21 = smov 0  }
   0x3 LB: > { %s751_s22 = sadd.s32 4294967295, %s695_s21   ;;  %s504_s23 = sadd.s32 4294967294, %s695_s21   ;;  %s695_s21 = sphi %s736_s21, %s925_s21   ;;  %s691_s20 = sphi %s734_s20, %s924_s20   ;;  %s687_s19 = sphi %s732_s19, %s923_s19   ;;  %s683_s18 = sphi %s730_s18, %s922_s18  }
   0x4   : > { %s755_s24 = sadd.s32 1, %s695_s21   ;;  %s135_s25 = sadd.s32 1, %s691_s20 }
   0x5   : > { %s132_s26 = ssub.s32 %s695_s21, %s755_s24  ;;  %p145_p0 = scmp.ne.s32.totalorder %s691_s20, %s687_s19 }
   0x6   : > { %p133_p1 = scmp.eq.s32.totalorder %s132_s26, 0  ;;  %p146_p2 = scmp.eq.s32.totalorder %s751_s22, 1 }
   0x7   : > { %p151_p3 = scmp.ne.s32.totalorder %s687_s19, %s683_s18  ;;  %p152_p4 = scmp.eq.s32.totalorder %s504_s23, 1 }
   0x8   : > { %s766_s27 = scalar_select %p133_p1, %s691_s20, %s135_s25  }
   0x9   : > { %p768_p5 = por %p146_p2, %p145_p0  ;;  %p772_p6 = por %p152_p4, %p151_p3 }
   0xa   : > { %p507_p7 = scmp.ge.s32.totalorder %s695_s21, 1  ;;  %p189_p8 = scmp.lt.s32.totalorder %s695_s21, 3 }
   0xc   : > { %p190_p9 = pnand %p507_p7, %p189_p8 }
   0xd   : > { %p216_p10 = scmp.lt.s32.totalorder (!%p190_p9), %s751_s22, 1  ;;  %s213_s6 = sand.u32 (!%p190_p9), 1, %s687_s19  }
   0xe   : > { %193 = sbr.rel (%p190_p9) target bundleno = 773 (0x305), region = 40  ;;  %s508_s7 = sshll.u32 (!%p190_p9), %s213_s6, 3 }
   0xf   : > { %s215_s13 = scalar_lea.vmem (!%p190_p9), [#allocation2], %s508_s7  ;;  %s432_s23 = scalar_lea.sflag (!%p190_p9), [#allocation3], %s213_s6 }
  0x10   : > { %s445_s14 = sshll.u32 (!%p190_p9), %s215_s13, 4  ;;  %s699_s26 = smov (!%p190_p9), [#allocation2]   ;;  %s446_s14 = int_to_ptr.vmem [resolvable:$true] %s445_s14 }
  0x11   : > { %s635_s25 = scalar_lea.vmem (!%p190_p9), %s446_s14, 128  ;;  %s639_s30 = sshll.u32 (!%p190_p9), %s699_s26, 4  ;;  %s640_s30 = int_to_ptr.vmem [resolvable:$false] %s639_s30 }
  0x12   : > { %p636_p11 = scmp.ne.s32.totalorder (!%p190_p9), %s446_s14, %s635_s25  ;;  %p642_p0 = scmp.lt.s32.totalorder (!%p190_p9), %s446_s14, %s640_s30 }
  0x13   : > { %v224_v0 = vld [vmem:[%s915_s1 + $0x18] sm:$0xff]  ;;  %v697_v1 = vmov 0.0   ;;  %v223_v2 = vld [vmem:[%s915_s1 + $0x10] sm:$0xff]  ;;  %vm698_vm0 = vmmov 0   ;;  %s217_s9 = scalar_select %p216_p10, %s751_s22, 1  ;;  %v222_v3 = vld [vmem:[%s915_s1 + $0x8] sm:$0xff] }
  0x14   : > { %542 = vmatprep.subr.mxu0 %v697_v1  ;;  %550 = vmatprep.mubr.msk.f32.mxu0 %vm698_vm0, %v697_v1  ;;  %v221_v4 = vld [vmem:[%s915_s1] sm:$0xff]  ;;  %vm232_vm1 = vcmask 261120   ;;  %v328_v6 = vld [vmem:[%s917_s3 + $0x78] sm:$0xff]  ;;  %v327_v7 = vld [vmem:[%s917_s3 + $0x70] sm:$0xff]  ;;  %vm404_vm2 = vcmask 195584   ;;  %p637_p12 = pnand %p636_p11, %p768_p5 }
  0x15   : > { %543 = vmatpush3.msra.mxu0 %v224_v0  ;;  %553 = vmatprep.subr.mxu1 %v697_v1  ;;  %s509_s12 = sshll.u32 %s217_s9, 3  ;;  %v326_v8 = vld [vmem:[%s917_s3 + $0x68] sm:$0xff]  ;;  %v325_v9 = vld [vmem:[%s917_s3 + $0x60] sm:$0xff]  ;;  %v324_v10 = vld [vmem:[%s917_s3 + $0x58] sm:$0xff] }
  0x16   : > { %544 = vmatprep.subr.mxu0 %v697_v1  ;;  %585 = vmatprep.mubr.msk.f32.mxu1 %vm698_vm0, %v697_v1  ;;  %s219_s17 = scalar_lea.vmem %s914_s0, %s509_s12  ;;  %v323_v11 = vld [vmem:[%s917_s3 + $0x50] sm:$0xff]  ;;  %v322_v12 = vld [vmem:[%s917_s3 + $0x48] sm:$0xff]  ;;  %v321_v13 = vld [vmem:[%s917_s3 + $0x40] sm:$0xff]  ;;  %s517_s12 = sshll.u32 %s751_s22, 7 }
  0x17   : > { %545 = vmatpush3.msra.mxu0 %v223_v2  ;;  %v220_v5 = vld [vmem:[%s219_s17] sm:$0xff]  ;;  %554 = vmatpush3.msra.mxu1 %v328_v6  ;;  %v320_v14 = vld [vmem:[%s917_s3 + $0x38] sm:$0xff]  ;;  %v319_v15 = vld [vmem:[%s917_s3 + $0x30] sm:$0xff]  ;;  %s443_s17 = scalar_lea.hbm %s919_s5, %s517_s12  ;;  %p638_p13 = pneg %p637_p12 }
  0x18   : > { %546 = vmatprep.subr.mxu0 %v697_v1  ;;  %555 = vmatprep.subr.mxu1 %v697_v1  ;;  %v318_v16 = vld [vmem:[%s917_s3 + $0x28] sm:$0xff]  ;;  %v317_v17 = vld [vmem:[%s917_s3 + $0x20] sm:$0xff]  ;;  %v316_v18 = vld [vmem:[%s917_s3 + $0x18] sm:$0xff]  ;;  %s641_s22 = scalar_lea.vmem %s640_s30, 256 }
  0x19   : > { %547 = vmatpush3.msra.mxu0 %v222_v3  ;;  %556 = vmatpush3.msra.mxu1 %v327_v7  ;;  %v315_v19 = vld [vmem:[%s917_s3 + $0x10] sm:$0xff]  ;;  %v314_v20 = vld [vmem:[%s917_s3 + $0x8] sm:$0xff]  ;;  %v313_v21 = vld [vmem:[%s917_s3] sm:$0xff]  ;;  %p643_p1 = scmp.lt.s32.totalorder %s641_s22, %s635_s25 }
  0x1a   : > { %548 = vmatprep.subr.mxu0 %v697_v1  ;;  %557 = vmatprep.subr.mxu1 %v697_v1  ;;  %v510_v22 = vld [vmem:[%s916_s2] ss:$0 sm:$0xff]  ;;  %v514_v45 = vld [vmem:[%s918_s4 + $0x1] ss:$0 sm:$0xff]  ;;  %v515_v47 = vld [vmem:[%s918_s4 + $0x2] ss:$0 sm:$0xff] }
  0x1b   : > { %549 = vmatpush3.msra.mxu0 %v221_v4  ;;  %558 = vmatpush3.msra.mxu1 %v326_v8  ;;  %v513_v31 = vld [vmem:[%s918_s4] ss:$0 sm:$0xff]  ;;  %p644_p2 = por %p643_p1, %p642_p0 }
  0x1c   : > { %551 = vmatmul.mubr.msk.f32.vlgmr.msra.gmra.mxu0 %vm232_vm1, %v220_v5  ;;  %559 = vmatprep.subr.mxu1 %v697_v1 }
  0x1d   : > { %560 = vmatpush3.msra.mxu1 %v325_v9  ;;  %p645_p3 = pnand %p644_p2, %p638_p13 }
  0x1e   : > { %561 = vmatprep.subr.mxu1 %v697_v1 }
  0x1f   : > { %562 = vmatpush3.msra.mxu1 %v324_v10 }
  0x20   : > { %563 = vmatprep.subr.mxu1 %v697_v1 }
  0x21   : > { %564 = vmatpush3.msra.mxu1 %v323_v11 }
  0x22   : > { %565 = vmatprep.subr.mxu1 %v697_v1 }
  0x23   : > { %566 = vmatpush3.msra.mxu1 %v322_v12 }
  0x24   : > { %567 = vmatprep.subr.mxu1 %v697_v1 }
  0x25   : > { %568 = vmatpush3.msra.mxu1 %v321_v13 }
  0x26   : > { %569 = vmatprep.subr.mxu1 %v697_v1 }
  0x27   : > { %570 = vmatpush3.msra.mxu1 %v320_v14 }
  0x28   : > { %571 = vmatprep.subr.mxu1 %v697_v1 }
  0x29   : > { %572 = vmatpush3.msra.mxu1 %v319_v15 }
  0x2a   : > { %573 = vmatprep.subr.mxu1 %v697_v1 }
  0x2b   : > { %574 = vmatpush3.msra.mxu1 %v318_v16 }
  0x2c   : > { %575 = vmatprep.subr.mxu1 %v697_v1 }
  0x2d   : > { %576 = vmatpush3.msra.mxu1 %v317_v17 }
  0x2e   : > { %577 = vmatprep.subr.mxu1 %v697_v1 }
  0x2f   : > { %578 = vmatpush3.msra.mxu1 %v316_v18 }
  0x30   : > { %579 = vmatprep.subr.mxu1 %v697_v1 }
  0x31   : > { %580 = vmatpush3.msra.mxu1 %v315_v19 }
  0x32   : > { %581 = vmatprep.subr.mxu1 %v697_v1 }
  0x33   : > { %582 = vmatpush3.msra.mxu1 %v314_v20 }
  0x34   : > { %583 = vmatprep.subr.mxu1 %v697_v1 }
  0x35   : > { %584 = vmatpush3.msra.mxu1 %v313_v21 }
  0xdc   : > { %v302_v23 = vpop.f32.mrf.mxu0 }
  0xdd   : > { %v303_v24 = vadd.f32 %v510_v22, %v302_v23 }
  0xde   : > { %v552_v25 = vpop.f32.mrf.mxu0 }
  0xdf   : > { %v512_v26 = vmul.f32 -1.442695, %v303_v24 }
  0xe1   : > { %629 = vpow2.f32 %v512_v26 }
  0xee   : > { %v630_v27 = vpop.eup %629 }
  0xef   : > { %v309_v28 = vadd.f32 1.0, %v630_v27 }
  0xf1   : > { %631 = vrcp.f32 %v309_v28 }
  0xfe   : > { %v632_v29 = vpop.eup %631 }
  0xff   : > { %v312_v30 = vmul.f32 %v632_v29, %v303_v24 }
 0x101   : > { %586 = vmatmul.mubr.f32.vlgmr.msra.gmra.mxu1 %v312_v30 }
 0x1c1   : > { %v400_v32 = vpop.f32.mrf.mxu1 }
 0x1c2   : > { %v401_v33 = vadd.f32 %v513_v31, %v400_v32 }
 0x1c3   : > { %v587_v34 = vpop.f32.mrf.mxu1 }
 0x1c4   : > { %v405_v35 = vsel %vm404_vm2, %v401_v33, 0.0 }
 0x1c5   : > { %406 = vadd.xlane.f32.xlu0 %v405_v35 }
 0x24e   : > { %v407_v36 = vpop.xlane.xlu0 %406 }
 0x24f   : > { %v408_v37 = vmul.f32 0.041666668, %v407_v36 }
 0x251   : > { %v409_v38 = vsub.f32 %v401_v33, %v408_v37 }
 0x253   : > { %v410_v39 = vmul.f32 %v409_v38, %v409_v38 }
 0x255   : > { %v411_v40 = vsel %vm404_vm2, %v410_v39, 0.0 }
 0x256   : > { %412 = vadd.xlane.f32.xlu0 %v411_v40 }
 0x2df   : > { %v413_v41 = vpop.xlane.xlu0 %412 }
 0x2e0   : > { %v414_v42 = vmul.f32 0.041666668, %v413_v41 }
 0x2e2   : > { %v415_v43 = vadd.f32 1e-06, %v414_v42 }
 0x2e4   : > { %633 = vrsqrt.f32 %v415_v43 }
 0x2f1   : > { %v634_v44 = vpop.eup %633 }
 0x2f2   : > { %v417_v46 = vmul.f32 %v634_v44, %v409_v38 }
 0x2f4   : > { %v423_v48 = vmul.f32 %v514_v45, %v417_v46 }
 0x2f6   : > { %v429_v49 = vadd.f32 %v515_v47, %v423_v48 }
 0x2f8   : > { %430 = vst.msk [vmem:[%s215_s13] sm:$0xff] %vm404_vm2, %v429_v49 }
 0x2f9   : > { %648 = shalt.err (!%p645_p3)
}
 0x2fa   : > { %s649_s7 = scalar_lea.hbm %s443_s17, 128  ;;  %s653_s9 = scalar_lea.hbm %s919_s5, 256 }
 0x2fb   : > { %p650_p4 = scmp.ne.s32.totalorder %s443_s17, %s649_s7  ;;  %p654_p9 = scmp.lt.s32.totalorder %s443_s17, %s919_s5 }
 0x2fc   : > { %p655_p10 = scmp.lt.s32.totalorder %s653_s9, %s649_s7 }
 0x2fd   : > { %p651_p7 = pnand %p650_p4, %p768_p5 }
 0x2fe   : > { %p656_p11 = por %p655_p10, %p654_p9 }
 0x2ff   : > { %p652_p8 = pneg %p651_p7 }
 0x301   : > { %p657_p12 = pnand %p656_p11, %p652_p8 }
 0x303   : > { %660 = shalt.err (!%p657_p12)
}
 0x304   : > { %588 = dma.vmem_to_hbm [thread:$0]  (%p768_p5), %s446_s14, 128, %s443_s17, %s432_s23  }
 0x305 PF: > { %p594_p13 = scmp.ge.s32.totalorder %s695_s21, 2  ;;  %s457_s12 = sand.u32 1, %s683_s18  }
 0x306   : > { %s458_s13 = scalar_lea.sflag [#allocation3], %s457_s12 }
 0x307   : > { %p591_p0 = pnand %p594_p13, %p772_p6 }
 0x309   : > { %p592_p1 = pneg %p591_p0 }
 0x30b   : > { %678 = dma.done.wait (%p592_p1), %s458_s13, 128  }
 0x30c   : > { %680 = vsyncadd (%p592_p1), %s458_s13, 4294967168  ;;  %p15_p2 = scmp.ge.s32.totalorder %s755_s24, 4   ;;  %s922_s18 = smov %s687_s19 }
 0x30d   : > { %s923_s19 = smov %s691_s20  ;;  %s924_s20 = smov %s766_s27 }
 0x30e   : > { %s925_s21 = smov %s755_s24  ;;  %17 = sbr.rel (!%p15_p2) target bundleno = 3 (0x3), region = 75 }
 0x313   :  { %463 = vsyncpa [#allocation3], 1 }
 0x314   :  { %465 = vsyncpa [#allocation3 + $0x1], 1 }

</bundles_post_ra>
